<compile_context>
chip_gen: v7x
topology: tpu7x:2x2x1
jax: 0.10.0
libtpu: 0.0.40
codegen_flags: <defaults>
</compile_context>

<pallas_src>
import jax
import jax.numpy as jnp
from jax.experimental import pallas as pl
from jax.experimental.pallas import tpu as pltpu


def _round_up(n, m):
    return ((n + m - 1) // m) * m


def _mlp_kernel(x_ref, w1_ref, b1_ref, w2_ref, b2_ref, out_ref, hid_ref):
    # One batch tile per grid step; weights/biases are VMEM-resident (constant
    # index_map) and tiny. Compute in lane-padded (128-wide) space on the MXU,
    # but store ONLY the live lanes so HBM writeback stays unamplified.
    x = x_ref[...]                                                    # (TB, F) f32

    # fc1 + bias + ReLU  (K = F, N = H_pad = 128; padded hidden lanes are exact zeros)
    h = jnp.dot(x, w1_ref[...], preferred_element_type=jnp.float32)   # (TB, H_pad)
    h = jnp.maximum(h + b1_ref[...], 0.0)
    hid_ref[...] = h[:, : hid_ref.shape[-1]].astype(hid_ref.dtype)    # (TB, H) store

    # fc2 + bias  (zero rows of w2t beyond H contribute nothing)
    o = jnp.dot(h, w2_ref[...], preferred_element_type=jnp.float32)   # (TB, C_pad)
    o = o + b2_ref[...]
    out_ref[...] = o[:, : out_ref.shape[-1]].astype(out_ref.dtype)    # (TB, C) store


def prepare_params(w1, b1, w2, b2):
    """One-time parameter prep: transpose + zero-pad weights to lane-friendly layouts.

    w1: (H, F), b1: (H,), w2: (C, H), b2: (C,)  (PyTorch nn.Linear layout).
    Only the (tiny) weights are padded; activations stay at logical widths.
    """
    H, F = w1.shape
    C = w2.shape[0]
    H_pad = _round_up(H, 128)
    C_pad = _round_up(C, 128)

    w1t = jnp.zeros((F, H_pad), jnp.float32).at[:, :H].set(
        jnp.asarray(w1, jnp.float32).T)
    b1r = jnp.zeros((1, H_pad), jnp.float32).at[0, :H].set(
        jnp.asarray(b1, jnp.float32))
    w2t = jnp.zeros((H_pad, C_pad), jnp.float32).at[:H, :C].set(
        jnp.asarray(w2, jnp.float32).T)
    b2r = jnp.zeros((1, C_pad), jnp.float32).at[0, :C].set(
        jnp.asarray(b2, jnp.float32))

    return {
        "w1t": w1t, "b1r": b1r, "w2t": w2t, "b2r": b2r,
        "F": F, "H": H, "C": C, "H_pad": H_pad, "C_pad": C_pad,
    }


def lyrics_classifier_forward(x, params, *, block_batch=4096):
    """Forward pass. x: (B, F); params from `prepare_params`.
    Returns (outputs (B, C), hidden (B, H)) — same semantics as the PyTorch module."""
    x = jnp.asarray(x, jnp.float32)
    B, F = x.shape
    assert F == params["F"], "feature dim mismatch with prepared params"
    H, C = params["H"], params["C"]
    H_pad, C_pad = params["H_pad"], params["C_pad"]
    w1t, b1r, w2t, b2r = params["w1t"], params["b1r"], params["w2t"], params["b2r"]

    # Batch tile: as large as possible (amortizes ~0.35 us per grid step and keeps
    # the x DMA pipelined), but capped so the grid has ~4 steps when B is big
    # enough — dimension_semantics=("parallel",) then shards across v7x's two TCs.
    TB = max(8, min(block_batch, _round_up(pl.cdiv(B, 4), 8)))
    grid = (pl.cdiv(B, TB),)   # partial last block: OOB rows are never written back

    # Advisory cost hint: memory-bound MLP (logical bytes only).
    flops = 2 * B * (F * H + H * C)
    bytes_accessed = 4 * (B * (F + H + C) + F * H + H * C + H + C)

    outputs, hidden = pl.pallas_call(
        _mlp_kernel,
        out_shape=(
            jax.ShapeDtypeStruct((B, C), jnp.float32),   # logits, unpadded
            jax.ShapeDtypeStruct((B, H), jnp.float32),   # hidden, unpadded
        ),
        grid=grid,
        in_specs=[
            pl.BlockSpec((TB, F), lambda i: (i, 0)),        # x tile (unpadded lanes)
            pl.BlockSpec((F, H_pad), lambda i: (0, 0)),     # w1t (resident)
            pl.BlockSpec((1, H_pad), lambda i: (0, 0)),     # b1  (resident)
            pl.BlockSpec((H_pad, C_pad), lambda i: (0, 0)), # w2t (resident)
            pl.BlockSpec((1, C_pad), lambda i: (0, 0)),     # b2  (resident)
        ],
        out_specs=(
            pl.BlockSpec((TB, C), lambda i: (i, 0)),
            pl.BlockSpec((TB, H), lambda i: (i, 0)),
        ),
        compiler_params=pltpu.CompilerParams(
            dimension_semantics=("parallel",),            # megacore-shard the batch
            vmem_limit_bytes=48 * 1024 * 1024,            # headroom for TB=4096 tiles
        ),
        cost_estimate=pl.CostEstimate(
            flops=flops, transcendentals=0, bytes_accessed=bytes_accessed),
    )(x, w1t, b1r, w2t, b2r)

    return outputs, hidden


def _init_linear(key, out_features, in_features):
    """Deterministic init mimicking torch.nn.Linear default (uniform +/- 1/sqrt(fan_in))."""
    kw, kb = jax.random.split(key)
    bound = 1.0 / jnp.sqrt(jnp.float32(in_features))
    w = jax.random.uniform(kw, (out_features, in_features), jnp.float32, -bound, bound)
    b = jax.random.uniform(kb, (out_features,), jnp.float32, -bound, bound)
    return w, b


def _reference_forward(x, w1, b1, w2, b2):
    h = jnp.maximum(x @ w1.T + b1, 0.0)
    return h @ w2.T + b2, h


if __name__ == "__main__":
    key = jax.random.PRNGKey(0)
    k_x, k_fc1, k_fc2 = jax.random.split(key, 3)

    B = 8          # batch
    F = 32         # tf-idf / bag-of-words feature dim (X.size(1) in the original)
    H = 10         # fc1 hidden units
    C = 6          # len(set(labels)) — six decade buckets

    x = jax.random.normal(k_x, (B, F), jnp.float32)
    w1, b1 = _init_linear(k_fc1, H, F)
    w2, b2 = _init_linear(k_fc2, C, H)

    # One-time parameter prep (transpose + pad), hoisted out of the forward path.
    params = prepare_params(w1, b1, w2, b2)

    outputs, hidden = lyrics_classifier_forward(x, params)
    jax.block_until_ready((outputs, hidden))

    ref_out, ref_hid = _reference_forward(x, w1, b1, w2, b2)
    assert outputs.shape == (B, C) and hidden.shape == (B, H)
    assert jnp.allclose(outputs, ref_out, atol=1e-5, rtol=1e-5)
    assert jnp.allclose(hidden, ref_hid, atol=1e-5, rtol=1e-5)

    print("KERNEL_OK")
</pallas_src>

<mosaic_0001>
module attributes {stable_mosaic.version = 11 : i64} {
  func.func @_mlp_kernel(%arg0: i32, %arg1: memref<8x32xf32, #tpu.memory_space<vmem>>, %arg2: memref<32x128xf32, #tpu.memory_space<vmem>>, %arg3: memref<1x128xf32, #tpu.memory_space<vmem>>, %arg4: memref<128x128xf32, #tpu.memory_space<vmem>>, %arg5: memref<1x128xf32, #tpu.memory_space<vmem>>, %arg6: memref<8x6xf32, #tpu.memory_space<vmem>>, %arg7: memref<8x10xf32, #tpu.memory_space<vmem>>) attributes {dimension_semantics = [#tpu.dimension_semantics<parallel>], iteration_bounds = array<i64: 1>, scalar_prefetch = 0 : i64, scratch_operands = 0 : i64, tpu.core_type = #tpu.core_type<tc>, window_params = [{transform_indices = @transform_0, window_bounds = array<i64: 8, 32>}, {pipeline_mode = #tpu.pipeline_mode<synchronous>, transform_indices = @transform_1, window_bounds = array<i64: 32, 128>}, {pipeline_mode = #tpu.pipeline_mode<synchronous>, transform_indices = @transform_2, window_bounds = array<i64: 1, 128>}, {pipeline_mode = #tpu.pipeline_mode<synchronous>, transform_indices = @transform_3, window_bounds = array<i64: 128, 128>}, {pipeline_mode = #tpu.pipeline_mode<synchronous>, transform_indices = @transform_4, window_bounds = array<i64: 1, 128>}, {transform_indices = @transform_5, window_bounds = array<i64: 8, 6>}, {transform_indices = @transform_6, window_bounds = array<i64: 8, 10>}]} {
    %c0 = arith.constant 0 : index
    %c0_0 = arith.constant 0 : index
    %0 = vector.load %arg1[%c0, %c0_0] : memref<8x32xf32, #tpu.memory_space<vmem>>, vector<8x32xf32>
    %c0_1 = arith.constant 0 : index
    %c0_2 = arith.constant 0 : index
    %1 = vector.load %arg2[%c0_1, %c0_2] : memref<32x128xf32, #tpu.memory_space<vmem>>, vector<32x128xf32>
    %cst = arith.constant dense<0.000000e+00> : vector<8x128xf32>
    %2 = tpu.matmul %0, %1, %cst {dimension_numbers = #tpu.dot_dimension_numbers<[1], [0], [0], [1], [0, 0, 1, 1], [], []>} : vector<8x32xf32>, vector<32x128xf32>, vector<8x128xf32> -> vector<8x128xf32>
    %c0_3 = arith.constant 0 : index
    %c0_4 = arith.constant 0 : index
    %3 = vector.load %arg3[%c0_3, %c0_4] : memref<1x128xf32, #tpu.memory_space<vmem>>, vector<1x128xf32>
    %4 = vector.broadcast %3 : vector<1x128xf32> to vector<8x128xf32>
    %5 = arith.addf %2, %4 : vector<8x128xf32>
    %cst_5 = arith.constant 0.000000e+00 : f32
    %6 = vector.broadcast %cst_5 : f32 to vector<8x128xf32>
    %7 = arith.maximumf %5, %6 : vector<8x128xf32>
    %8 = vector.extract_strided_slice %7 {offsets = [0, 0], sizes = [8, 10], strides = [1, 1]} : vector<8x128xf32> to vector<8x10xf32>
    %c0_6 = arith.constant 0 : index
    %c0_7 = arith.constant 0 : index
    %9 = vector.load %arg7[%c0_6, %c0_7] : memref<8x10xf32, #tpu.memory_space<vmem>>, vector<8x10xf32>
    tpu.vector_store %arg7[%c0_6, %c0_7], %8 {strides = array<i32>} : memref<8x10xf32, #tpu.memory_space<vmem>>, vector<8x10xf32>,
    %c0_8 = arith.constant 0 : index
    %c0_9 = arith.constant 0 : index
    %10 = vector.load %arg4[%c0_8, %c0_9] : memref<128x128xf32, #tpu.memory_space<vmem>>, vector<128x128xf32>
    %cst_10 = arith.constant dense<0.000000e+00> : vector<8x128xf32>
    %11 = tpu.matmul %7, %10, %cst_10 {dimension_numbers = #tpu.dot_dimension_numbers<[1], [0], [0], [1], [0, 0, 1, 1], [], []>} : vector<8x128xf32>, vector<128x128xf32>, vector<8x128xf32> -> vector<8x128xf32>
    %c0_11 = arith.constant 0 : index
    %c0_12 = arith.constant 0 : index
    %12 = vector.load %arg5[%c0_11, %c0_12] : memref<1x128xf32, #tpu.memory_space<vmem>>, vector<1x128xf32>
    %13 = vector.broadcast %12 : vector<1x128xf32> to vector<8x128xf32>
    %14 = arith.addf %11, %13 : vector<8x128xf32>
    %15 = vector.extract_strided_slice %14 {offsets = [0, 0], sizes = [8, 6], strides = [1, 1]} : vector<8x128xf32> to vector<8x6xf32>
    %c0_13 = arith.constant 0 : index
    %c0_14 = arith.constant 0 : index
    %16 = vector.load %arg6[%c0_13, %c0_14] : memref<8x6xf32, #tpu.memory_space<vmem>>, vector<8x6xf32>
    tpu.vector_store %arg6[%c0_13, %c0_14], %15 {strides = array<i32>} : memref<8x6xf32, #tpu.memory_space<vmem>>, vector<8x6xf32>,
    return
  }
  func.func @transform_0(%arg0: i32) -> (i32, i32) {
    %c0_i32 = arith.constant 0 : i32
    %c0_i32_0 = arith.constant 0 : i32
    return %arg0, %c0_i32 : i32, i32
  }
  func.func @transform_1(%arg0: i32) -> (i32, i32) {
    %c0_i32 = arith.constant 0 : i32
    %c0_i32_0 = arith.constant 0 : i32
    %c0_i32_1 = arith.constant 0 : i32
    return %c0_i32, %c0_i32_0 : i32, i32
  }
  func.func @transform_2(%arg0: i32) -> (i32, i32) {
    %c0_i32 = arith.constant 0 : i32
    %c0_i32_0 = arith.constant 0 : i32
    %c0_i32_1 = arith.constant 0 : i32
    return %c0_i32, %c0_i32_0 : i32, i32
  }
  func.func @transform_3(%arg0: i32) -> (i32, i32) {
    %c0_i32 = arith.constant 0 : i32
    %c0_i32_0 = arith.constant 0 : i32
    %c0_i32_1 = arith.constant 0 : i32
    return %c0_i32, %c0_i32_0 : i32, i32
  }
  func.func @transform_4(%arg0: i32) -> (i32, i32) {
    %c0_i32 = arith.constant 0 : i32
    %c0_i32_0 = arith.constant 0 : i32
    %c0_i32_1 = arith.constant 0 : i32
    return %c0_i32, %c0_i32_0 : i32, i32
  }
  func.func @transform_5(%arg0: i32) -> (i32, i32) {
    %c0_i32 = arith.constant 0 : i32
    %c0_i32_0 = arith.constant 0 : i32
    return %arg0, %c0_i32 : i32, i32
  }
  func.func @transform_6(%arg0: i32) -> (i32, i32) {
    %c0_i32 = arith.constant 0 : i32
    %c0_i32_0 = arith.constant 0 : i32
    return %arg0, %c0_i32 : i32, i32
  }
}

</mosaic_0001>

<bundles_post_ra>
// kernel: tpu_custom_call.1
= control target key start
LH: loop header
LB: loop body
LE: loop exit
PB: predicated region body
PF: predicated region fallthrough
CT: control target
= control target key end

     0   :  { %12 = vsyncpa [#allocation3], 0  ;;  %s623_s0 = inlined_call_operand.hbm [shape: f32[8,32], index: 0, kind: input, shape index: {}]   ;;  %s624_s1 = inlined_call_operand.hbm [shape: f32[32,128], index: 1, kind: input, shape index: {}]   ;;  %s625_s2 = inlined_call_operand.vmem [shape: f32[1,128], index: 2, kind: input, shape index: {}]   ;;  %s626_s3 = inlined_call_operand.hbm [shape: f32[128,128], index: 3, kind: input, shape index: {}]   ;;  %s627_s4 = inlined_call_operand.vmem [shape: f32[1,128], index: 4, kind: input, shape index: {}]   ;;  %s628_s5 = inlined_call_operand.hbm [shape: f32[8,6], index: 5, kind: output, shape index: {0}]   ;;  %s629_s6 = inlined_call_operand.hbm [shape: f32[8,10], index: 6, kind: output, shape index: {1}]  }
   0x1   :  { %13 = vsyncpa [#allocation6], 0 }
   0x2   :  { %14 = vsyncpa [#allocation4], 0 }
   0x3   :  { %15 = vsyncpa [#allocation10], 0  ;;  %s506_s21 = smov [#allocation5]   ;;  %s388_s25 = scalar_lea.hbm %s624_s1, 512 }
   0x4   :  { %s31_s22 = sshll.u32 %s506_s21, 4  ;;  %p389_p0 = scmp.ne.s32.totalorder %s624_s1, %s388_s25  ;;  %s32_s22 = int_to_ptr.vmem [resolvable:$true] %s31_s22 }
   0x5   :  { %p392_p1 = scmp.lt.u32.totalorder %s388_s25, %s624_s1 }
   0x7   :  { %p394_p2 = pnand %p392_p1, %p389_p0 }
   0x9   :  { %397 = shalt.err (!%p394_p2)
}
   0xa   :  { %s398_s30 = scalar_lea.vmem %s32_s22, 512  ;;  %p403_p4 = scmp.lt.s32.totalorder %s32_s22, %s32_s22 }
   0xb   :  { %p399_p3 = scmp.ne.s32.totalorder %s32_s22, %s398_s30  ;;  %p404_p5 = scmp.lt.s32.totalorder %s398_s30, %s398_s30 }
   0xd   :  { %p405_p6 = por %p404_p5, %p403_p4 }
   0xf   :  { %p406_p7 = pnand %p405_p6, %p399_p3 }
  0x11   :  { %409 = shalt.err (!%p406_p7)
}
  0x12   :  { %s507_s7 = smov 128   ;;  %s508_s8 = smov 8  }
  0x13   :  { %37 = dma.hbm_to_vmem [thread:$0]  %s624_s1, 512, %s32_s22, [#allocation6], %s507_s7, %s507_s7, %s508_s8  }
  0x14   :  { %s509_s11 = smov [#allocation2]   ;;  %s510_s13 = smov [#allocation7]  }
  0x15   :  { %s22_s12 = sshll.u32 %s509_s11, 4  ;;  %s45_s14 = sshll.u32 %s510_s13, 4  ;;  %s23_s12 = int_to_ptr.vmem [resolvable:$true] %s22_s12  ;;  %s46_s14 = int_to_ptr.vmem [resolvable:$true] %s45_s14 }
  0x16   :  { %s410_s17 = scalar_lea.hbm %s623_s0, 128 }
  0x17   :  { %p411_p8 = scmp.ne.s32.totalorder %s623_s0, %s410_s17  ;;  %p414_p9 = scmp.lt.u32.totalorder %s410_s17, %s623_s0 }
  0x19   :  { %p416_p10 = pnand %p414_p9, %p411_p8 }
  0x1b   :  { %419 = shalt.err (!%p416_p10)
}
  0x1c   :  { %s420_s1 = scalar_lea.vmem %s23_s12, 128  ;;  %p425_p12 = scmp.lt.s32.totalorder %s23_s12, %s23_s12 }
  0x1d   :  { %p421_p11 = scmp.ne.s32.totalorder %s23_s12, %s420_s1  ;;  %p426_p13 = scmp.lt.s32.totalorder %s420_s1, %s420_s1 }
  0x1f   :  { %p427_p0 = por %p426_p13, %p425_p12 }
  0x21   :  { %p428_p1 = pnand %p427_p0, %p421_p11 }
  0x23   :  { %431 = shalt.err (!%p428_p1)
}
  0x24   :  { %25 = dma.hbm_to_vmem [thread:$0]  %s623_s0, 128, %s23_s12, [#allocation3]  }
  0x25   :  { %s432_s26 = scalar_lea.hbm %s626_s3, 2048 }
  0x26   :  { %p433_p2 = scmp.ne.s32.totalorder %s626_s3, %s432_s26  ;;  %p436_p3 = scmp.lt.u32.totalorder %s432_s26, %s626_s3 }
  0x28   :  { %p438_p4 = pnand %p436_p3, %p433_p2 }
  0x2a   :  { %441 = shalt.err (!%p438_p4)
}
  0x2b   :  { %s442_s9 = scalar_lea.vmem %s46_s14, 2048  ;;  %p447_p6 = scmp.lt.s32.totalorder %s46_s14, %s46_s14 }
  0x2c   :  { %p443_p5 = scmp.ne.s32.totalorder %s46_s14, %s442_s9  ;;  %p448_p7 = scmp.lt.s32.totalorder %s442_s9, %s442_s9 }
  0x2e   :  { %p449_p8 = por %p448_p7, %p447_p6 }
  0x30   :  { %p450_p9 = pnand %p449_p8, %p443_p5 }
  0x32   :  { %453 = shalt.err (!%p450_p9)
}
  0x33   :  { %51 = dma.hbm_to_vmem [thread:$0]  %s626_s3, 2048, %s46_s14, [#allocation6], %s507_s7, %s507_s7, %s508_s8  }
  0x34   :  { %498 = dma.done.wait [#allocation3], 128  }
  0x35   :  { %499 = vsyncadd [#allocation3], 4294967168 }
  0x36   :  { %500 = dma.done.wait [#allocation6], 2560  }
  0x37   :  { %501 = vsyncadd [#allocation6], 4294964736  ;;  %v511_v0 = vmov 0.0|0.0   ;;  %vm512_vm0 = vmmov 0   ;;  %v513_v1 = vmov 0.0   ;;  %v64_v2 = vld [vmem:[#allocation5] sm:$0xff] }
  0x38   :  { %348 = vmatprep.subr.bf16.mxu0 %v511_v0  ;;  %310 = vmatprep.mubr.msk.f32.mxu0 %vm512_vm0, %v513_v1  ;;  %v65_v3 = vld [vmem:[#allocation5 + $0x8] sm:$0xff]  ;;  %v66_v4 = vld [vmem:[#allocation5 + $0x10] sm:$0xff]  ;;  %v67_v6 = vld [vmem:[#allocation5 + $0x18] sm:$0xff]  ;;  %vm75_vm1 = vcmask 261120   ;;  %vm150_vm2 = vcmask 80896   ;;  %s514_s8 = smov [#allocation9]  }
  0x39   :  { %354 = vmatprep.subr.bf16.mxu1 %v511_v0  ;;  %345 = vmatprep.mubr.msk.f32.mxu1 %vm512_vm0, %v513_v1  ;;  %v349_v5 = vpack.c.bf16 %v65_v3, %v64_v2  ;;  %v152_v7 = vld [vmem:[#allocation7] sm:$0xff]  ;;  %v153_v8 = vld [vmem:[#allocation7 + $0x8] sm:$0xff]  ;;  %v154_v9 = vld [vmem:[#allocation7 + $0x10] sm:$0xff]  ;;  %v352_v11 = vpack.c.bf16 %v67_v6, %v66_v4  ;;  %s263_s11 = sshll.u32 %s514_s8, 4  ;;  %s264_s11 = int_to_ptr.vmem [resolvable:$true] %s263_s11 }
  0x3a   :  { %v155_v10 = vld [vmem:[#allocation7 + $0x18] sm:$0xff]  ;;  %v355_v12 = vpack.c.bf16 %v153_v8, %v152_v7  ;;  %v156_v14 = vld [vmem:[#allocation7 + $0x20] sm:$0xff]  ;;  %v157_v15 = vld [vmem:[#allocation7 + $0x28] sm:$0xff]  ;;  %s454_s12 = scalar_lea.vmem %s264_s11, 128  ;;  %p459_p11 = scmp.lt.s32.totalorder %s264_s11, %s264_s11 }
  0x3b   :  { %350 = vmatpush3.bf16.msra.mxu0 %v349_v5  ;;  %v358_v13 = vpack.c.bf16 %v155_v10, %v154_v9  ;;  %v63_v16 = vld [vmem:[#allocation2] sm:$0xff]  ;;  %v361_v17 = vpack.c.bf16 %v157_v15, %v156_v14  ;;  %v158_v18 = vld [vmem:[#allocation7 + $0x30] sm:$0xff]  ;;  %v160_v21 = vld [vmem:[#allocation7 + $0x40] sm:$0xff]  ;;  %p455_p10 = scmp.ne.s32.totalorder %s264_s11, %s454_s12  ;;  %p460_p12 = scmp.lt.s32.totalorder %s454_s12, %s454_s12 }
  0x3c   :  { %351 = vmatprep.subr.bf16.mxu0 %v511_v0  ;;  %356 = vmatpush3.bf16.msra.mxu1 %v355_v12  ;;  %v159_v19 = vld [vmem:[#allocation7 + $0x38] sm:$0xff]  ;;  %v161_v22 = vld [vmem:[#allocation7 + $0x48] sm:$0xff]  ;;  %v162_v24 = vld [vmem:[#allocation7 + $0x50] sm:$0xff] }
  0x3d   :  { %357 = vmatprep.subr.bf16.mxu1 %v511_v0  ;;  %v364_v20 = vpack.c.bf16 %v159_v19, %v158_v18  ;;  %v367_v23 = vpack.c.bf16 %v161_v22, %v160_v21  ;;  %v163_v25 = vld [vmem:[#allocation7 + $0x58] sm:$0xff]  ;;  %v164_v27 = vld [vmem:[#allocation7 + $0x60] sm:$0xff]  ;;  %v165_v28 = vld [vmem:[#allocation7 + $0x68] sm:$0xff]  ;;  %p461_p13 = por %p460_p12, %p459_p11 }
  0x3e   :  { %v370_v26 = vpack.c.bf16 %v163_v25, %v162_v24  ;;  %v373_v29 = vpack.c.bf16 %v165_v28, %v164_v27  ;;  %v166_v30 = vld [vmem:[#allocation7 + $0x70] sm:$0xff]  ;;  %v167_v31 = vld [vmem:[#allocation7 + $0x78] sm:$0xff] }
  0x3f   :  { %353 = vmatpush3.bf16.msra.mxu0 %v352_v11  ;;  %v376_v32 = vpack.c.bf16 %v167_v31, %v166_v30  ;;  %v277_v33 = vld [vmem:[%s625_s2] ss:$0 sm:$0xff]  ;;  %p462_p0 = pnand %p461_p13, %p455_p10 }
  0x40   :  { %359 = vmatpush3.bf16.msra.mxu1 %v358_v13 }
  0x41   :  { %360 = vmatprep.subr.bf16.mxu1 %v511_v0 }
  0x42   :  { %311 = vmatmul.mubr.msk.f32.vlgmr.msra.gmra.mrb[0].mxu0 %vm75_vm1, %v63_v16 }
  0x44   :  { %362 = vmatpush3.bf16.msra.mxu1 %v361_v17 }
  0x45   :  { %363 = vmatprep.subr.bf16.mxu1 %v511_v0 }
  0x48   :  { %365 = vmatpush3.bf16.msra.mxu1 %v364_v20 }
  0x49   :  { %366 = vmatprep.subr.bf16.mxu1 %v511_v0 }
  0x4c   :  { %368 = vmatpush3.bf16.msra.mxu1 %v367_v23 }
  0x4d   :  { %369 = vmatprep.subr.bf16.mxu1 %v511_v0 }
  0x50   :  { %371 = vmatpush3.bf16.msra.mxu1 %v370_v26 }
  0x51   :  { %372 = vmatprep.subr.bf16.mxu1 %v511_v0 }
  0x54   :  { %374 = vmatpush3.bf16.msra.mxu1 %v373_v29 }
  0x55   :  { %375 = vmatprep.subr.bf16.mxu1 %v511_v0 }
  0x58   :  { %377 = vmatpush3.bf16.msra.mxu1 %v376_v32 }
 0x115   :  { %v145_v34 = vpop.f32.mrb[0].mxu0 }
 0x116   :  { %v146_v35 = vadd.f32 %v277_v33, %v145_v34  ;;  %v312_v36 = vpop.f32.mrb[1].mxu0 }
 0x118   :  { %v149_v37 = vmax.f32 %v146_v35, 0.0 }
 0x11a   :  { %346 = vmatmul.mubr.f32.vlgmr.msra.gmra.mrb[0].mxu1 %v149_v37  ;;  %151 = vst.msk [vmem:[#allocation9] sm:$0xff] %vm150_vm2, %v149_v37 }
 0x11b   :  { %465 = shalt.err (!%p462_p0)
}
 0x11c   :  { %s466_s2 = scalar_lea.hbm %s629_s6, 128 }
 0x11d   :  { %p467_p1 = scmp.ne.s32.totalorder %s629_s6, %s466_s2  ;;  %p470_p2 = scmp.lt.u32.totalorder %s466_s2, %s629_s6 }
 0x11f   :  { %p472_p3 = pnand %p470_p2, %p467_p1 }
 0x121   :  { %475 = shalt.err (!%p472_p3)
}
 0x122   :  { %266 = dma.vmem_to_hbm [thread:$0]  %s264_s11, 128, %s629_s6, [#allocation10]   ;;  %v279_v38 = vld [vmem:[%s627_s4] ss:$0 sm:$0xff]  ;;  %vm245_vm3 = vcmask 48128  }
 0x123   :  { %s515_s22 = smov [#allocation8]  }
 0x124   :  { %s253_s23 = sshll.u32 %s515_s22, 4  ;;  %s254_s23 = int_to_ptr.vmem [resolvable:$true] %s253_s23 }
 0x125   :  { %s476_s24 = scalar_lea.vmem %s254_s23, 128  ;;  %p481_p5 = scmp.lt.s32.totalorder %s254_s23, %s254_s23 }
 0x126   :  { %p477_p4 = scmp.ne.s32.totalorder %s254_s23, %s476_s24  ;;  %p482_p6 = scmp.lt.s32.totalorder %s476_s24, %s476_s24 }
 0x128   :  { %p483_p7 = por %p482_p6, %p481_p5 }
 0x12a   :  { %p484_p8 = pnand %p483_p7, %p477_p4 }
 0x1ed   :  { %v241_v39 = vpop.f32.mrb[0].mxu1 }
 0x1ee   :  { %v242_v40 = vadd.f32 %v279_v38, %v241_v39  ;;  %v347_v41 = vpop.f32.mrb[1].mxu1 }
 0x1f0   :  { %246 = vst.msk [vmem:[#allocation8] sm:$0xff] %vm245_vm3, %v242_v40 }
 0x1f1   :  { %487 = shalt.err (!%p484_p8)
}
 0x1f2   :  { %s488_s26 = scalar_lea.hbm %s628_s5, 128 }
 0x1f3   :  { %p489_p9 = scmp.ne.s32.totalorder %s628_s5, %s488_s26  ;;  %p492_p10 = scmp.lt.u32.totalorder %s488_s26, %s628_s5 }
 0x1f5   :  { %p494_p11 = pnand %p492_p10, %p489_p9 }
 0x1f7   :  { %497 = shalt.err (!%p494_p11)
}
 0x1f8   :  { %256 = dma.vmem_to_hbm [thread:$0]  %s254_s23, 128, %s628_s5, [#allocation4]  }
 0x1f9   :  { %502 = dma.done.wait [#allocation4], 128  }
 0x1fa   :  { %503 = vsyncadd [#allocation4], 4294967168 }
 0x1fb   :  { %504 = dma.done.wait [#allocation10], 128  }
 0x1fc   :  { %505 = vsyncadd [#allocation10], 4294967168 }
 0x1fd   :  { %273 = vsyncpa [#allocation3], 1 }
 0x1fe   :  { %274 = vsyncpa [#allocation6], 1 }
 0x1ff   :  { %275 = vsyncpa [#allocation4], 1 }
 0x200   :  { %276 = vsyncpa [#allocation10], 1 }

</bundles_post_ra>
